<compile_context>
chip_gen: v7x
topology: tpu7x:2x2x1
jax: 0.10.0
libtpu: 0.0.40
codegen_flags: <defaults>
</compile_context>

<pallas_src>
import jax
import jax.numpy as jnp
import numpy as np
from jax import lax
from jax.experimental import pallas as pl
from jax.experimental.pallas import tpu as pltpu

HIDDEN = 32          # hidden_dim
VOCAB = 4            # DyckLanguage(NUM_PAR=2) vocab: '(', ')', '[', ']'
OUTPUT = 4           # output_size
N_LAYERS = 1


# ----------------------------------------------------------------------------
# Parameter preparation (done once, host side)
# ----------------------------------------------------------------------------
def prepare_params(params):
    """Fold embedding lookup + input projection + both RNN biases into one table.

    emb_proj[v] = embedding[v] @ W_ih^T + b_ih + b_hh

    The original module uses nn.Embedding(hidden_dim, vocab_size) (HIDDEN rows), but the
    Dyck task only ever feeds token ids < VOCAB, so only the first VOCAB rows are live.
    Layout (VOCAB, 1, HIDDEN): the token selects along the leading, untiled axis and the
    kernel view of a row is a clean (1, HIDDEN) tile.
    """
    emb_proj = (params["embedding"] @ params["w_ih"].T
                + params["b_ih"][None, :]
                + params["b_hh"][None, :]).astype(jnp.float32)        # (HIDDEN, HIDDEN)
    emb_proj = emb_proj[:VOCAB].reshape(VOCAB, 1, HIDDEN)             # live rows only
    return {
        "emb_proj": emb_proj,                                         # (VOCAB, 1, HIDDEN)
        "w_hh_t":   params["w_hh"].T.astype(jnp.float32),             # (HIDDEN, HIDDEN)
        "w_y_t":    params["w_y"].T.astype(jnp.float32),              # (HIDDEN, OUTPUT)
        "b_y":      params["b_y"].reshape(1, OUTPUT).astype(jnp.float32),
    }


# ----------------------------------------------------------------------------
# Whole-sequence kernel: single grid step, time loop inside (unrolled fori_loop)
# ----------------------------------------------------------------------------
def _rnn_seq_kernel(toks_ref,     # SMEM (T,) int32   (scalar prefetch)
                    embp_ref,     # VMEM (VOCAB, 1, HIDDEN)  resident folded table
                    w_hh_t_ref,   # VMEM (HIDDEN, HIDDEN)    W_hh^T, resident
                    w_y_t_ref,    # VMEM (HIDDEN, OUTPUT)    W_y^T,  resident
                    b_y_ref,      # VMEM (1, OUTPUT)
                    h0_ref,       # VMEM (1, HIDDEN)
                    out_ref,      # VMEM (T, OUTPUT)  written once at the end
                    hN_ref,       # VMEM (1, HIDDEN)  final hidden, written once
                    h_slab):      # VMEM (T, HIDDEN)  scratch: per-step hidden states
    T = out_ref.shape[0]
    w_hh_t = w_hh_t_ref[...]                       # hoist weight load out of the loop

    def step(t, h):
        tok = toks_ref[t]                          # SMEM scalar read
        emb = embp_ref[tok]                        # (1, HIDDEN) dynamic leading-axis load
        h_new = jnp.tanh(emb + jnp.dot(h, w_hh_t, preferred_element_type=jnp.float32))
        h_slab[pl.ds(t, 1), :] = h_new             # stash for the batched projection
        return h_new                               # carry stays in vregs

    h_final = lax.fori_loop(0, T, step, h0_ref[...], unroll=True)
    hN_ref[...] = h_final

    # One batched output projection + sigmoid for the whole sequence.
    y = jax.nn.sigmoid(
        jnp.dot(h_slab[...], w_y_t_ref[...], preferred_element_type=jnp.float32)
        + b_y_ref[...])
    out_ref[...] = y


def vanilla_rnn_mod_forward_seq(tokens, prep, hidden0):
    """Equivalent to calling VanillaRNN_mod.forward once per token, chaining hidden.

    tokens:  (T,) int32
    returns: (outputs (T, OUTPUT), final hidden (N_LAYERS, 1, HIDDEN))
    """
    tokens = jnp.asarray(tokens, jnp.int32).reshape(-1)
    T = int(tokens.shape[0])
    h0 = hidden0.reshape(1, HIDDEN).astype(jnp.float32)

    grid_spec = pltpu.PrefetchScalarGridSpec(
        num_scalar_prefetch=1,
        grid=(1,),
        in_specs=[
            pl.BlockSpec((VOCAB, 1, HIDDEN), lambda i, toks: (0, 0, 0)),
            pl.BlockSpec((HIDDEN, HIDDEN), lambda i, toks: (0, 0)),
            pl.BlockSpec((HIDDEN, OUTPUT), lambda i, toks: (0, 0)),
            pl.BlockSpec((1, OUTPUT), lambda i, toks: (0, 0)),
            pl.BlockSpec((1, HIDDEN), lambda i, toks: (0, 0)),
        ],
        out_specs=[
            pl.BlockSpec((T, OUTPUT), lambda i, toks: (0, 0)),
            pl.BlockSpec((1, HIDDEN), lambda i, toks: (0, 0)),
        ],
        scratch_shapes=[pltpu.VMEM((T, HIDDEN), jnp.float32)],
    )
    outs, h_final = pl.pallas_call(
        _rnn_seq_kernel,
        grid_spec=grid_spec,
        out_shape=(jax.ShapeDtypeStruct((T, OUTPUT), jnp.float32),
                   jax.ShapeDtypeStruct((1, HIDDEN), jnp.float32)),
        compiler_params=pltpu.CompilerParams(dimension_semantics=("arbitrary",)),
    )(tokens, prep["emb_proj"], prep["w_hh_t"], prep["w_y_t"], prep["b_y"], h0)

    return outs, h_final.reshape(N_LAYERS, 1, HIDDEN)


def vanilla_rnn_mod_forward(tok, prep, hidden0):
    """One forward step of VanillaRNN_mod (matches the module's forward signature).

    Implemented as the sequence kernel with T=1: the table is resident, the token is a
    single SMEM scalar, no per-row DMA.  (A lone 1x32 step is launch-bound regardless.)
    """
    tok_arr = jnp.asarray(tok, jnp.int32).reshape(1)
    outs, h_final = vanilla_rnn_mod_forward_seq(tok_arr, prep, hidden0)
    return outs.reshape(-1, OUTPUT), h_final


# ----------------------------------------------------------------------------
# Reference + test harness
# ----------------------------------------------------------------------------
def init_params(key):
    ks = jax.random.split(key, 7)
    s = 1.0 / np.sqrt(HIDDEN)
    return {
        "embedding": jax.random.normal(ks[0], (HIDDEN, VOCAB), jnp.float32),
        "w_ih": jax.random.uniform(ks[1], (HIDDEN, VOCAB), jnp.float32, -s, s),
        "b_ih": jax.random.uniform(ks[2], (HIDDEN,), jnp.float32, -s, s),
        "w_hh": jax.random.uniform(ks[3], (HIDDEN, HIDDEN), jnp.float32, -s, s),
        "b_hh": jax.random.uniform(ks[4], (HIDDEN,), jnp.float32, -s, s),
        "w_y": jax.random.uniform(ks[5], (OUTPUT, HIDDEN), jnp.float32, -s, s),
        "b_y": jax.random.uniform(ks[6], (OUTPUT,), jnp.float32, -s, s),
    }


def reference_step(tok, params, h):
    x = params["embedding"][tok]                                   # (VOCAB,)
    pre = (x @ params["w_ih"].T + params["b_ih"]
           + h @ params["w_hh"].T + params["b_hh"])
    h_new = jnp.tanh(pre)
    y = jax.nn.sigmoid(h_new @ params["w_y"].T + params["b_y"])
    return y, h_new


if __name__ == "__main__":
    key = jax.random.PRNGKey(0)
    params = init_params(key)
    prep = prepare_params(params)

    hidden0 = jnp.zeros((N_LAYERS, 1, HIDDEN), jnp.float32)        # initHidden()

    # --- single-step forward (matches the original module's forward) ---
    token = jnp.asarray(3, jnp.int32)
    out, hidden = vanilla_rnn_mod_forward(token, prep, hidden0)
    out = jax.block_until_ready(out)
    hidden = jax.block_until_ready(hidden)

    ref_y, ref_h = reference_step(int(token), params, hidden0.reshape(HIDDEN))
    np.testing.assert_allclose(np.asarray(out), np.asarray(ref_y).reshape(1, OUTPUT),
                               rtol=1e-5, atol=1e-5)
    np.testing.assert_allclose(np.asarray(hidden),
                               np.asarray(ref_h).reshape(N_LAYERS, 1, HIDDEN),
                               rtol=1e-5, atol=1e-5)

    # --- sequence forward (whole unroll in one pallas_call) ---
    T = 8
    tokens = jax.random.randint(jax.random.PRNGKey(1), (T,), 0, VOCAB, dtype=jnp.int32)
    outs, h_final = vanilla_rnn_mod_forward_seq(tokens, prep, hidden0)
    outs = jax.block_until_ready(outs)
    h_final = jax.block_until_ready(h_final)

    h = hidden0.reshape(HIDDEN)
    ref_outs = []
    for t in np.asarray(tokens):
        y, h = reference_step(int(t), params, h)
        ref_outs.append(np.asarray(y))
    ref_outs = np.stack(ref_outs, axis=0)
    np.testing.assert_allclose(np.asarray(outs), ref_outs, rtol=1e-5, atol=1e-5)
    np.testing.assert_allclose(np.asarray(h_final),
                               np.asarray(h).reshape(N_LAYERS, 1, HIDDEN),
                               rtol=1e-5, atol=1e-5)

    print("KERNEL_OK")
</pallas_src>

<mosaic_0001>
module attributes {stable_mosaic.version = 11 : i64} {
  func.func @_rnn_seq_kernel(%arg0: i32, %arg1: memref<1xi32, #tpu.memory_space<smem>>, %arg2: memref<4x1x32xf32, #tpu.memory_space<vmem>>, %arg3: memref<32x32xf32, #tpu.memory_space<vmem>>, %arg4: memref<32x4xf32, #tpu.memory_space<vmem>>, %arg5: memref<1x4xf32, #tpu.memory_space<vmem>>, %arg6: memref<1x32xf32, #tpu.memory_space<vmem>>, %arg7: memref<1x4xf32, #tpu.memory_space<vmem>>, %arg8: memref<1x32xf32, #tpu.memory_space<vmem>>, %arg9: memref<1x32xf32, #tpu.memory_space<vmem>>) attributes {dimension_semantics = [#tpu.dimension_semantics<arbitrary>], iteration_bounds = array<i64: 1>, scalar_prefetch = 1 : i64, scratch_operands = 1 : i64, tpu.core_type = #tpu.core_type<tc>, window_params = [{pipeline_mode = #tpu.pipeline_mode<synchronous>, transform_indices = @transform_0, window_bounds = array<i64: 4, 1, 32>}, {pipeline_mode = #tpu.pipeline_mode<synchronous>, transform_indices = @transform_1, window_bounds = array<i64: 32, 32>}, {pipeline_mode = #tpu.pipeline_mode<synchronous>, transform_indices = @transform_2, window_bounds = array<i64: 32, 4>}, {pipeline_mode = #tpu.pipeline_mode<synchronous>, transform_indices = @transform_3, window_bounds = array<i64: 1, 4>}, {pipeline_mode = #tpu.pipeline_mode<synchronous>, transform_indices = @transform_4, window_bounds = array<i64: 1, 32>}, {pipeline_mode = #tpu.pipeline_mode<synchronous>, transform_indices = @transform_5, window_bounds = array<i64: 1, 4>}, {pipeline_mode = #tpu.pipeline_mode<synchronous>, transform_indices = @transform_6, window_bounds = array<i64: 1, 32>}]} {
    %c0 = arith.constant 0 : index
    %c0_0 = arith.constant 0 : index
    %0 = vector.load %arg3[%c0, %c0_0] : memref<32x32xf32, #tpu.memory_space<vmem>>, vector<32x32xf32>
    %c0_1 = arith.constant 0 : index
    %c0_2 = arith.constant 0 : index
    %1 = vector.load %arg6[%c0_1, %c0_2] : memref<1x32xf32, #tpu.memory_space<vmem>>, vector<1x32xf32>
    %c0_i32 = arith.constant 0 : i32
    %2 = arith.index_cast %c0_i32 : i32 to index
    %3 = memref.load %arg1[%2] : memref<1xi32, #tpu.memory_space<smem>>
    %4 = arith.index_cast %3 : i32 to index
    %c0_3 = arith.constant 0 : index
    %c0_4 = arith.constant 0 : index
    %5 = vector.load %arg2[%4, %c0_3, %c0_4] : memref<4x1x32xf32, #tpu.memory_space<vmem>>, vector<1x1x32xf32>
    %6 = vector.shape_cast %5 : vector<1x1x32xf32> to vector<1x32xf32>
    %cst = arith.constant dense<0.000000e+00> : vector<1x32xf32>
    %7 = tpu.matmul %1, %0, %cst {dimension_numbers = #tpu.dot_dimension_numbers<[1], [0], [0], [1], [0, 0, 1, 1], [], []>} : vector<1x32xf32>, vector<32x32xf32>, vector<1x32xf32> -> vector<1x32xf32>
    %8 = arith.addf %6, %7 : vector<1x32xf32>
    %9 = math.tanh %8 : vector<1x32xf32>
    %10 = arith.index_cast %c0_i32 : i32 to index
    %c0_5 = arith.constant 0 : index
    %11 = vector.load %arg9[%10, %c0_5] : memref<1x32xf32, #tpu.memory_space<vmem>>, vector<1x32xf32>
    tpu.vector_store %arg9[%10, %c0_5], %9 {strides = array<i32>} : memref<1x32xf32, #tpu.memory_space<vmem>>, vector<1x32xf32>,
    %c1_i32 = arith.constant 1 : i32
    %c0_6 = arith.constant 0 : index
    %c0_7 = arith.constant 0 : index
    %12 = vector.load %arg8[%c0_6, %c0_7] : memref<1x32xf32, #tpu.memory_space<vmem>>, vector<1x32xf32>
    tpu.vector_store %arg8[%c0_6, %c0_7], %9 {strides = array<i32>} : memref<1x32xf32, #tpu.memory_space<vmem>>, vector<1x32xf32>,
    %c0_8 = arith.constant 0 : index
    %c0_9 = arith.constant 0 : index
    %13 = vector.load %arg9[%c0_8, %c0_9] : memref<1x32xf32, #tpu.memory_space<vmem>>, vector<1x32xf32>
    %c0_10 = arith.constant 0 : index
    %c0_11 = arith.constant 0 : index
    %14 = vector.load %arg4[%c0_10, %c0_11] : memref<32x4xf32, #tpu.memory_space<vmem>>, vector<32x4xf32>
    %cst_12 = arith.constant dense<0.000000e+00> : vector<1x4xf32>
    %15 = tpu.matmul %13, %14, %cst_12 {dimension_numbers = #tpu.dot_dimension_numbers<[1], [0], [0], [1], [0, 0, 1, 1], [], []>} : vector<1x32xf32>, vector<32x4xf32>, vector<1x4xf32> -> vector<1x4xf32>
    %c0_13 = arith.constant 0 : index
    %c0_14 = arith.constant 0 : index
    %16 = vector.load %arg5[%c0_13, %c0_14] : memref<1x4xf32, #tpu.memory_space<vmem>>, vector<1x4xf32>
    %17 = arith.addf %15, %16 : vector<1x4xf32>
    %18 = arith.negf %17 : vector<1x4xf32>
    %19 = math.exp %18 : vector<1x4xf32>
    %cst_15 = arith.constant 1.000000e+00 : f32
    %20 = vector.broadcast %cst_15 : f32 to vector<1x4xf32>
    %21 = arith.addf %20, %19 : vector<1x4xf32>
    %22 = arith.divf %20, %21 : vector<1x4xf32>
    %c0_16 = arith.constant 0 : index
    %c0_17 = arith.constant 0 : index
    %23 = vector.load %arg7[%c0_16, %c0_17] : memref<1x4xf32, #tpu.memory_space<vmem>>, vector<1x4xf32>
    tpu.vector_store %arg7[%c0_16, %c0_17], %22 {strides = array<i32>} : memref<1x4xf32, #tpu.memory_space<vmem>>, vector<1x4xf32>,
    return
  }
  func.func @transform_0(%arg0: i32, %arg1: memref<1xi32, #tpu.memory_space<smem>>) -> (i32, i32, i32) {
    %c0_i32 = arith.constant 0 : i32
    %c0_i32_0 = arith.constant 0 : i32
    %c0_i32_1 = arith.constant 0 : i32
    %c0_i32_2 = arith.constant 0 : i32
    return %c0_i32, %c0_i32_0, %c0_i32_1 : i32, i32, i32
  }
  func.func @transform_1(%arg0: i32, %arg1: memref<1xi32, #tpu.memory_space<smem>>) -> (i32, i32) {
    %c0_i32 = arith.constant 0 : i32
    %c0_i32_0 = arith.constant 0 : i32
    %c0_i32_1 = arith.constant 0 : i32
    return %c0_i32, %c0_i32_0 : i32, i32
  }
  func.func @transform_2(%arg0: i32, %arg1: memref<1xi32, #tpu.memory_space<smem>>) -> (i32, i32) {
    %c0_i32 = arith.constant 0 : i32
    %c0_i32_0 = arith.constant 0 : i32
    %c0_i32_1 = arith.constant 0 : i32
    return %c0_i32, %c0_i32_0 : i32, i32
  }
  func.func @transform_3(%arg0: i32, %arg1: memref<1xi32, #tpu.memory_space<smem>>) -> (i32, i32) {
    %c0_i32 = arith.constant 0 : i32
    %c0_i32_0 = arith.constant 0 : i32
    %c0_i32_1 = arith.constant 0 : i32
    return %c0_i32, %c0_i32_0 : i32, i32
  }
  func.func @transform_4(%arg0: i32, %arg1: memref<1xi32, #tpu.memory_space<smem>>) -> (i32, i32) {
    %c0_i32 = arith.constant 0 : i32
    %c0_i32_0 = arith.constant 0 : i32
    %c0_i32_1 = arith.constant 0 : i32
    return %c0_i32, %c0_i32_0 : i32, i32
  }
  func.func @transform_5(%arg0: i32, %arg1: memref<1xi32, #tpu.memory_space<smem>>) -> (i32, i32) {
    %c0_i32 = arith.constant 0 : i32
    %c0_i32_0 = arith.constant 0 : i32
    %c0_i32_1 = arith.constant 0 : i32
    return %c0_i32, %c0_i32_0 : i32, i32
  }
  func.func @transform_6(%arg0: i32, %arg1: memref<1xi32, #tpu.memory_space<smem>>) -> (i32, i32) {
    %c0_i32 = arith.constant 0 : i32
    %c0_i32_0 = arith.constant 0 : i32
    %c0_i32_1 = arith.constant 0 : i32
    return %c0_i32, %c0_i32_0 : i32, i32
  }
}

</mosaic_0001>

<bundles_post_ra>
// kernel: tpu_custom_call.1
= control target key start
LH: loop header
LB: loop body
LE: loop exit
PB: predicated region body
PF: predicated region fallthrough
CT: control target
= control target key end

     0   :  { %14 = vsyncpa [#allocation6], 0  ;;  %v335_v3 = vmov 0.0|0.0   ;;  %vm336_vm0 = vmmov 0   ;;  %v337_v6 = vmov 0.0   ;;  %s442_s0 = inlined_call_operand.<no memory space> [shape: s32[1], index: 0, kind: input, shape index: {}]   ;;  %s443_s1 = inlined_call_operand.vmem [shape: f32[4,1,32], index: 1, kind: input, shape index: {}]   ;;  %s444_s2 = inlined_call_operand.vmem [shape: f32[32,32], index: 2, kind: input, shape index: {}]   ;;  %s445_s3 = inlined_call_operand.vmem [shape: f32[32,4], index: 3, kind: input, shape index: {}]   ;;  %s446_s4 = inlined_call_operand.vmem [shape: f32[1,4], index: 4, kind: input, shape index: {}]   ;;  %s447_s5 = inlined_call_operand.vmem [shape: f32[1,32], index: 5, kind: input, shape index: {}]   ;;  %s448_s6 = inlined_call_operand.hbm [shape: f32[1,4], index: 6, kind: output, shape index: {0}]   ;;  %s449_s7 = inlined_call_operand.hbm [shape: f32[1,32], index: 7, kind: output, shape index: {1}]  }
   0x1   :  { %v26_v0 = vld [vmem:[%s444_s2] sm:$0xff]  ;;  %v27_v1 = vld [vmem:[%s444_s2 + $0x8] sm:$0xff]  ;;  %v28_v2 = vld [vmem:[%s444_s2 + $0x10] sm:$0xff]  ;;  %264 = vmatprep.subr.bf16.mxu0 %v335_v3  ;;  %250 = vmatprep.mubr.msk.f32.mxu0 %vm336_vm0, %v337_v6 }
   0x2   :  { %v265_v4 = vpack.c.bf16 %v27_v1, %v26_v0  ;;  %v29_v5 = vld [vmem:[%s444_s2 + $0x18] sm:$0xff]  ;;  %270 = vmatprep.subr.bf16.mxu1 %v335_v3  ;;  %261 = vmatprep.mubr.msk.f32.mxu1 %vm336_vm0, %v337_v6 }
   0x3   :  { %15 = vsyncpa [#allocation8], 0  ;;  %v268_v7 = vpack.c.bf16 %v29_v5, %v28_v2  ;;  %v30_v8 = vld [vmem:[%s447_s5] sm:$0x1]  ;;  %vm34_vm1 = vcmask 261120   ;;  %v115_v10 = vld [vmem:[%s445_s3 + $0x8] sm:$0xff]  ;;  %s32_s21 = scalar_lea.vmem %s443_s1, %s442_s0 }
   0x4   :  { %266 = vmatpush3.bf16.msra.mxu0 %v265_v4  ;;  %v114_v9 = vld [vmem:[%s445_s3] sm:$0xff]  ;;  %v116_v12 = vld [vmem:[%s445_s3 + $0x10] sm:$0xff]  ;;  %v117_v13 = vld [vmem:[%s445_s3 + $0x18] sm:$0xff]  ;;  %vm110_vm2 = vcmask 253952   ;;  %s338_s3 = smov [#allocation7]  }
   0x5   :  { %267 = vmatprep.subr.bf16.mxu0 %v335_v3  ;;  %v271_v11 = vpack.c.bf16 %v115_v10, %v114_v9  ;;  %v274_v14 = vpack.c.bf16 %v117_v13, %v116_v12  ;;  %v33_v15 = vld [vmem:[%s32_s21] sm:$0x1]  ;;  %s216_s22 = sshll.u32 %s338_s3, 4  ;;  %s217_s22 = int_to_ptr.vmem [resolvable:$true] %s216_s22 }
   0x6   :  { %s287_s23 = scalar_lea.vmem %s217_s22, 16  ;;  %s291_s24 = scalar_lea.vmem %s217_s22, 32 }
   0x7   :  { %272 = vmatpush3.bf16.msra.mxu1 %v271_v11  ;;  %p288_p0 = scmp.ne.s32.totalorder %s217_s22, %s287_s23  ;;  %p292_p1 = scmp.lt.s32.totalorder %s217_s22, %s217_s22 }
   0x8   :  { %269 = vmatpush3.bf16.msra.mxu0 %v268_v7  ;;  %273 = vmatprep.subr.bf16.mxu1 %v335_v3  ;;  %p293_p2 = scmp.lt.s32.totalorder %s291_s24, %s287_s23 }
   0xa   :  { %p294_p3 = por %p293_p2, %p292_p1 }
   0xb   :  { %251 = vmatmul.mubr.msk.f32.vlgmr.msra.gmra.mrb[0].mxu0 %vm34_vm1, %v30_v8  ;;  %275 = vmatpush3.bf16.msra.mxu1 %v274_v14 }
   0xc   :  { %p295_p4 = pnand %p294_p3, %p288_p0 }
  0xde   :  { %v104_v16 = vpop.f32.mrb[0].mxu0 }
  0xdf   :  { %v108_v17 = vadd.f32 %v104_v16, %v33_v15  ;;  %v252_v18 = vpop.f32.mrb[1].mxu0 }
  0xe1   :  { %281 = vtanh.f32 %v108_v17 }
  0xeb   :  { %v282_v19 = vpop.eup %281 }
  0xec   :  { %111 = vst.msk [vmem:[#allocation2] sm:$0x1] %vm110_vm2, %v282_v19  ;;  %112 = vst.msk [vmem:[#allocation7] sm:$0x1] %vm110_vm2, %v282_v19 }
  0xf3   :  { %v113_v20 = vld [vmem:[#allocation2] sm:$0x1] }
  0xf4   :  { %262 = vmatmul.mubr.msk.f32.vlgmr.msra.gmra.mrb[0].mxu1 %vm34_vm1, %v113_v20 }
  0xf5   :  { %298 = shalt.err (!%p295_p4)
}
  0xf6   :  { %s299_s25 = scalar_lea.hbm %s449_s7, 16 }
  0xf7   :  { %p300_p5 = scmp.ne.s32.totalorder %s449_s7, %s299_s25  ;;  %p303_p6 = scmp.lt.u32.totalorder %s299_s25, %s449_s7 }
  0xf9   :  { %p305_p7 = pnand %p303_p6, %p300_p5 }
  0xfb   :  { %308 = shalt.err (!%p305_p7)
}
  0xfc   :  { %219 = dma.vmem_to_hbm [thread:$0]  %s217_s22, 16, %s449_s7, [#allocation8]   ;;  %v118_v21 = vld [vmem:[%s446_s4] sm:$0x1]  ;;  %vm198_vm3 = vcmask 24576  }
  0xfd   :  { %s339_s11 = smov [#allocation5]  }
  0xfe   :  { %s206_s12 = sshll.u32 %s339_s11, 4  ;;  %s207_s12 = int_to_ptr.vmem [resolvable:$true] %s206_s12 }
  0xff   :  { %s309_s2 = scalar_lea.vmem %s207_s12, 16  ;;  %s313_s7 = scalar_lea.vmem %s207_s12, 32 }
 0x100   :  { %p310_p8 = scmp.ne.s32.totalorder %s207_s12, %s309_s2  ;;  %p314_p9 = scmp.lt.s32.totalorder %s207_s12, %s207_s12 }
 0x101   :  { %p315_p10 = scmp.lt.s32.totalorder %s313_s7, %s309_s2 }
 0x103   :  { %p316_p11 = por %p315_p10, %p314_p9 }
 0x105   :  { %p317_p12 = pnand %p316_p11, %p310_p8 }
 0x1c7   :  { %v188_v22 = vpop.f32.mrb[0].mxu1 }
 0x1c8   :  { %v189_v23 = vadd.f32 %v188_v22, %v118_v21  ;;  %v263_v24 = vpop.f32.mrb[1].mxu1 }
 0x1ca   :  { %v231_v25 = vmul.f32 -1.442695, %v189_v23 }
 0x1cc   :  { %283 = vpow2.f32 %v231_v25 }
 0x1d6   :  { %v284_v26 = vpop.eup %283 }
 0x1d7   :  { %v195_v27 = vadd.f32 1.0, %v284_v26 }
 0x1d9   :  { %285 = vrcp.f32 %v195_v27 }
 0x1e3   :  { %v286_v28 = vpop.eup %285 }
 0x1e4   :  { %199 = vst.msk [vmem:[#allocation5] sm:$0x1] %vm198_vm3, %v286_v28 }
 0x1e5   :  { %320 = shalt.err (!%p317_p12)
}
 0x1e6   :  { %s321_s14 = scalar_lea.hbm %s448_s6, 16 }
 0x1e7   :  { %p322_p13 = scmp.ne.s32.totalorder %s448_s6, %s321_s14  ;;  %p325_p0 = scmp.lt.u32.totalorder %s321_s14, %s448_s6 }
 0x1e9   :  { %p327_p1 = pnand %p325_p0, %p322_p13 }
 0x1eb   :  { %330 = shalt.err (!%p327_p1)
}
 0x1ec   :  { %209 = dma.vmem_to_hbm [thread:$0]  %s207_s12, 16, %s448_s6, [#allocation6]  }
 0x1ed   :  { %331 = dma.done.wait [#allocation6], 16  }
 0x1ee   :  { %332 = vsyncadd [#allocation6], 4294967280 }
 0x1ef   :  { %333 = dma.done.wait [#allocation8], 16  }
 0x1f0   :  { %334 = vsyncadd [#allocation8], 4294967280 }
 0x1f1   :  { %226 = vsyncpa [#allocation6], 1 }
 0x1f2   :  { %227 = vsyncpa [#allocation8], 1 }

</bundles_post_ra>
